<compile_context>
chip_gen: v7x
topology: tpu7x:2x2x1
jax: 0.10.0
libtpu: 0.0.40
codegen_flags: <defaults>
</compile_context>

<pallas_src>
import functools

import jax
import jax.numpy as jnp
from jax.experimental import pallas as pl
from jax.experimental.pallas import tpu as pltpu

_BN_EPS = 1e-5
_LANE = 128
_SUBLANE = 8
_TILE_N = 256  # batch tile (rows per grid step)


def _round_up(x, m):
    return (x + m - 1) // m * m


def _fused_mlp_kernel(x_ref, w_ref, b_ref, o_ref, *, dims):
    """Whole MLP on one batch tile.

    x_ref : (TILE_N, din_0)        f32
    w_ref : (sum(din_i), W_max)    bf16  -- all folded layer weights stacked on rows
    b_ref : (n_layers, W_max)      f32   -- all folded biases stacked
    o_ref : (TILE_N, dout_last)    f32
    dims  : static tuple of (din_i, dout_i) per layer (all multiples of 128).

    Hidden layers: h = relu(h @ W'_i + b'_i)  (BN already folded into W'/b').
    Head:          y = h @ W'_head + b'_head  (columns zero-padded to a 128 multiple).
    Dropout is identity in eval mode.  Activations never leave VMEM/vregs.
    """
    n_layers = len(dims)
    h = x_ref[...].astype(jnp.bfloat16)  # MXU-native input dtype
    row = 0
    for i, (din, dout) in enumerate(dims):
        w = w_ref[row:row + din, :dout]          # static slice of the resident stack
        b = b_ref[i:i + 1, :dout]                # (1, dout), f32
        y = jnp.dot(h, w, preferred_element_type=jnp.float32) + b  # f32 accumulate
        if i < n_layers - 1:
            h = jnp.maximum(y, 0.0).astype(jnp.bfloat16)  # ReLU in f32, cast for next MXU
        else:
            h = y
        row += din
    o_ref[...] = h.astype(o_ref.dtype)


def fused_mlp(x, w_stack, b_stack, dims):
    """Single pallas_call, batch-tiled grid, parameters resident across steps."""
    n, f = x.shape
    f_pad = dims[0][0]
    out_pad = dims[-1][1]
    if f_pad != f:
        x = jnp.pad(x, ((0, 0), (0, f_pad - f)))
    tile_n = min(_TILE_N, _round_up(n, _SUBLANE))
    n_pad = _round_up(n, tile_n)
    if n_pad != n:
        x = jnp.pad(x, ((0, n_pad - n), (0, 0)))
    grid = (n_pad // tile_n,)

    out = pl.pallas_call(
        functools.partial(_fused_mlp_kernel, dims=dims),
        out_shape=jax.ShapeDtypeStruct((n_pad, out_pad), jnp.float32),
        grid=grid,
        in_specs=[
            pl.BlockSpec((tile_n, f_pad), lambda i: (i, 0)),        # x: tiled over batch
            pl.BlockSpec(w_stack.shape, lambda i: (0, 0)),          # weights: resident
            pl.BlockSpec(b_stack.shape, lambda i: (0, 0)),          # biases: resident
        ],
        out_specs=pl.BlockSpec((tile_n, out_pad), lambda i: (i, 0)),  # lane-dense store
        compiler_params=pltpu.CompilerParams(
            dimension_semantics=("parallel",),   # v7x: shard batch tiles over both TCs
        ),
    )(x, w_stack, b_stack)
    return out[:n]


def fold_params(params, input_size):
    """Fold eval-mode BN into each Linear, pad every dim to a 128 multiple, and stack
    all weights into one bf16 array + all biases into one f32 array (2 DMAs total)."""
    fused = []
    for layer in params[:-1]:
        scale = layer["gamma"] * jax.lax.rsqrt(layer["running_var"] + _BN_EPS)  # (1, h)
        w = layer["w"] * scale                                                   # (in, h)
        b = (layer["b"] - layer["running_mean"]) * scale + layer["beta"]         # (1, h)
        fused.append((w, b))
    fused.append((params[-1]["w"], params[-1]["b"]))

    w_max = max(_round_up(w.shape[1], _LANE) for w, _ in fused)
    din = _round_up(input_size, _LANE)
    w_blocks, b_blocks, dims = [], [], []
    for w, b in fused:
        dout = _round_up(w.shape[1], _LANE)
        wp = jnp.zeros((din, w_max), jnp.float32).at[: w.shape[0], : w.shape[1]].set(w)
        bp = jnp.zeros((1, w_max), jnp.float32).at[:, : w.shape[1]].set(b.reshape(1, -1))
        w_blocks.append(wp)
        b_blocks.append(bp)
        dims.append((din, dout))
        din = dout
    w_stack = jnp.concatenate(w_blocks, axis=0).astype(jnp.bfloat16)  # (sum_in, W_max)
    b_stack = jnp.concatenate(b_blocks, axis=0)                       # (n_layers, W_max) f32
    return w_stack, b_stack, tuple(dims)


def init_params(key, input_size, hidden_sizes, num_classes):
    """Deterministic init mirroring the PyTorch module's parameter shapes (eval mode)."""
    params = []
    prev = input_size
    sizes = list(hidden_sizes) + [num_classes]
    for i, h in enumerate(sizes):
        key, kw, kb = jax.random.split(key, 3)
        bound = 1.0 / jnp.sqrt(prev)
        w = jax.random.uniform(kw, (prev, h), jnp.float32, -bound, bound)
        b = jax.random.uniform(kb, (1, h), jnp.float32, -bound, bound)
        if i < len(hidden_sizes):
            layer = dict(
                w=w, b=b,
                gamma=jnp.ones((1, h), jnp.float32),
                beta=jnp.zeros((1, h), jnp.float32),
                running_mean=jnp.zeros((1, h), jnp.float32),
                running_var=jnp.ones((1, h), jnp.float32),
            )
        else:
            layer = dict(w=w, b=b)
        params.append(layer)
        prev = h
    return params


@functools.partial(jax.jit, static_argnames=("dims", "num_classes"))
def text_classifier_forward(x, w_stack, b_stack, dims, num_classes):
    out = fused_mlp(x, w_stack, b_stack, dims)   # (N, padded_classes), lane-dense
    return out[:, :num_classes]                  # slice back to real class count


# ---------------- references (plain JAX) ----------------

def _reference_original(x, params):
    """f32 reference with the ORIGINAL (un-folded) parameters."""
    h = x
    for layer in params[:-1]:
        y = h @ layer["w"] + layer["b"]
        y = (y - layer["running_mean"]) * jax.lax.rsqrt(layer["running_var"] + _BN_EPS)
        y = y * layer["gamma"] + layer["beta"]
        h = jnp.maximum(y, 0.0)
    return h @ params[-1]["w"] + params[-1]["b"]


def _reference_matched(x, w_stack, b_stack, dims, input_size, num_classes):
    """Reference that mirrors the kernel arithmetic (bf16 weights/activations, f32 acc)."""
    h = jnp.pad(x, ((0, 0), (0, dims[0][0] - input_size))).astype(jnp.bfloat16)
    row = 0
    for i, (din, dout) in enumerate(dims):
        w = w_stack[row:row + din, :dout]
        b = b_stack[i:i + 1, :dout]
        y = jnp.dot(h, w, preferred_element_type=jnp.float32) + b
        h = jnp.maximum(y, 0.0).astype(jnp.bfloat16) if i < len(dims) - 1 else y
        row += din
    return h[:, :num_classes]


if __name__ == "__main__":
    # Small shapes consistent with the module: input_size=256, hidden=[128, 128], classes=10.
    batch = 8
    input_size = 256
    hidden_sizes = [128, 128]
    num_classes = 10

    key = jax.random.PRNGKey(0)
    key, kx = jax.random.split(key)
    x = jax.random.normal(kx, (batch, input_size), jnp.float32)

    params = init_params(key, input_size, hidden_sizes, num_classes)
    w_stack, b_stack, dims = fold_params(params, input_size)   # done once, offline

    out = text_classifier_forward(x, w_stack, b_stack, dims, num_classes)
    jax.block_until_ready(out)
    assert out.shape == (batch, num_classes)

    # 1) Matched-precision reference (same bf16/f32 arithmetic as the kernel): tight check.
    ref_m = _reference_matched(x, w_stack, b_stack, dims, input_size, num_classes)
    assert jnp.allclose(out, ref_m, atol=1e-3, rtol=1e-3)

    # 2) Original f32 module semantics (un-folded BN, f32 weights): loose check, since the
    #    kernel uses bf16 weights/activations with f32 accumulation.
    ref_o = _reference_original(x, params)
    assert jnp.allclose(out, ref_o, atol=3e-2, rtol=3e-2)

    # 3) Exercise the multi-tile / ragged-batch path (grid > 1, row padding + slice-back).
    key, kx2 = jax.random.split(key)
    x2 = jax.random.normal(kx2, (320, input_size), jnp.float32)
    out2 = text_classifier_forward(x2, w_stack, b_stack, dims, num_classes)
    jax.block_until_ready(out2)
    ref2 = _reference_matched(x2, w_stack, b_stack, dims, input_size, num_classes)
    assert out2.shape == (320, num_classes)
    assert jnp.allclose(out2, ref2, atol=1e-3, rtol=1e-3)

    print("KERNEL_OK")
</pallas_src>

<mosaic_0001>
module attributes {stable_mosaic.version = 11 : i64} {
  func.func @_fused_mlp_kernel(%arg0: i32, %arg1: memref<8x256xf32, #tpu.memory_space<vmem>>, %arg2: memref<512x128xbf16, #tpu.memory_space<vmem>>, %arg3: memref<3x128xf32, #tpu.memory_space<vmem>>, %arg4: memref<8x128xf32, #tpu.memory_space<vmem>>) attributes {dimension_semantics = [#tpu.dimension_semantics<parallel>], iteration_bounds = array<i64: 1>, scalar_prefetch = 0 : i64, scratch_operands = 0 : i64, tpu.core_type = #tpu.core_type<tc>, window_params = [{transform_indices = @transform_0, window_bounds = array<i64: 8, 256>}, {pipeline_mode = #tpu.pipeline_mode<synchronous>, transform_indices = @transform_1, window_bounds = array<i64: 512, 128>}, {pipeline_mode = #tpu.pipeline_mode<synchronous>, transform_indices = @transform_2, window_bounds = array<i64: 3, 128>}, {transform_indices = @transform_3, window_bounds = array<i64: 8, 128>}]} {
    %c0 = arith.constant 0 : index
    %c0_0 = arith.constant 0 : index
    %0 = vector.load %arg1[%c0, %c0_0] : memref<8x256xf32, #tpu.memory_space<vmem>>, vector<8x256xf32>
    %1 = arith.truncf %0 : vector<8x256xf32> to vector<8x256xbf16>
    %c0_1 = arith.constant 0 : index
    %c0_2 = arith.constant 0 : index
    %2 = vector.load %arg2[%c0_1, %c0_2] : memref<512x128xbf16, #tpu.memory_space<vmem>>, vector<256x128xbf16>
    %c0_3 = arith.constant 0 : index
    %c0_4 = arith.constant 0 : index
    %3 = vector.load %arg3[%c0_3, %c0_4] : memref<3x128xf32, #tpu.memory_space<vmem>>, vector<1x128xf32>
    %cst = arith.constant dense<0.000000e+00> : vector<8x128xf32>
    %4 = tpu.matmul %1, %2, %cst {dimension_numbers = #tpu.dot_dimension_numbers<[1], [0], [0], [1], [0, 0, 1, 1], [], []>} : vector<8x256xbf16>, vector<256x128xbf16>, vector<8x128xf32> -> vector<8x128xf32>
    %5 = vector.broadcast %3 : vector<1x128xf32> to vector<8x128xf32>
    %6 = arith.addf %4, %5 : vector<8x128xf32>
    %cst_5 = arith.constant 0.000000e+00 : f32
    %7 = vector.broadcast %cst_5 : f32 to vector<8x128xf32>
    %8 = arith.maximumf %6, %7 : vector<8x128xf32>
    %9 = arith.truncf %8 : vector<8x128xf32> to vector<8x128xbf16>
    %c256 = arith.constant 256 : index
    %c0_6 = arith.constant 0 : index
    %10 = vector.load %arg2[%c256, %c0_6] : memref<512x128xbf16, #tpu.memory_space<vmem>>, vector<128x128xbf16>
    %c1 = arith.constant 1 : index
    %c0_7 = arith.constant 0 : index
    %11 = vector.load %arg3[%c1, %c0_7] : memref<3x128xf32, #tpu.memory_space<vmem>>, vector<1x128xf32>
    %cst_8 = arith.constant dense<0.000000e+00> : vector<8x128xf32>
    %12 = tpu.matmul %9, %10, %cst_8 {dimension_numbers = #tpu.dot_dimension_numbers<[1], [0], [0], [1], [0, 0, 1, 1], [], []>} : vector<8x128xbf16>, vector<128x128xbf16>, vector<8x128xf32> -> vector<8x128xf32>
    %13 = vector.broadcast %11 : vector<1x128xf32> to vector<8x128xf32>
    %14 = arith.addf %12, %13 : vector<8x128xf32>
    %cst_9 = arith.constant 0.000000e+00 : f32
    %15 = vector.broadcast %cst_9 : f32 to vector<8x128xf32>
    %16 = arith.maximumf %14, %15 : vector<8x128xf32>
    %17 = arith.truncf %16 : vector<8x128xf32> to vector<8x128xbf16>
    %c384 = arith.constant 384 : index
    %c0_10 = arith.constant 0 : index
    %18 = vector.load %arg2[%c384, %c0_10] : memref<512x128xbf16, #tpu.memory_space<vmem>>, vector<128x128xbf16>
    %c2 = arith.constant 2 : index
    %c0_11 = arith.constant 0 : index
    %19 = vector.load %arg3[%c2, %c0_11] : memref<3x128xf32, #tpu.memory_space<vmem>>, vector<1x128xf32>
    %cst_12 = arith.constant dense<0.000000e+00> : vector<8x128xf32>
    %20 = tpu.matmul %17, %18, %cst_12 {dimension_numbers = #tpu.dot_dimension_numbers<[1], [0], [0], [1], [0, 0, 1, 1], [], []>} : vector<8x128xbf16>, vector<128x128xbf16>, vector<8x128xf32> -> vector<8x128xf32>
    %21 = vector.broadcast %19 : vector<1x128xf32> to vector<8x128xf32>
    %22 = arith.addf %20, %21 : vector<8x128xf32>
    %c0_13 = arith.constant 0 : index
    %c0_14 = arith.constant 0 : index
    %23 = vector.load %arg4[%c0_13, %c0_14] : memref<8x128xf32, #tpu.memory_space<vmem>>, vector<8x128xf32>
    tpu.vector_store %arg4[%c0_13, %c0_14], %22 {strides = array<i32>} : memref<8x128xf32, #tpu.memory_space<vmem>>, vector<8x128xf32>,
    return
  }
  func.func @transform_0(%arg0: i32) -> (i32, i32) {
    %c0_i32 = arith.constant 0 : i32
    %c0_i32_0 = arith.constant 0 : i32
    return %arg0, %c0_i32 : i32, i32
  }
  func.func @transform_1(%arg0: i32) -> (i32, i32) {
    %c0_i32 = arith.constant 0 : i32
    %c0_i32_0 = arith.constant 0 : i32
    %c0_i32_1 = arith.constant 0 : i32
    return %c0_i32, %c0_i32_0 : i32, i32
  }
  func.func @transform_2(%arg0: i32) -> (i32, i32) {
    %c0_i32 = arith.constant 0 : i32
    %c0_i32_0 = arith.constant 0 : i32
    %c0_i32_1 = arith.constant 0 : i32
    return %c0_i32, %c0_i32_0 : i32, i32
  }
  func.func @transform_3(%arg0: i32) -> (i32, i32) {
    %c0_i32 = arith.constant 0 : i32
    %c0_i32_0 = arith.constant 0 : i32
    return %arg0, %c0_i32 : i32, i32
  }
}

</mosaic_0001>

<bundles_post_ra>
// kernel: text_classifier_forward.1
= control target key start
LH: loop header
LB: loop body
LE: loop exit
PB: predicated region body
PF: predicated region fallthrough
CT: control target
= control target key end

     0   :  { %8 = vsyncpa [#allocation3], 0  ;;  %s781_s0 = inlined_call_operand.hbm [shape: f32[8,256], index: 0, kind: input, shape index: {}]   ;;  %s782_s1 = inlined_call_operand.hbm [shape: bf16[512,128], index: 1, kind: input, shape index: {}]   ;;  %s783_s2 = inlined_call_operand.vmem [shape: f32[3,128], index: 2, kind: input, shape index: {}]   ;;  %s784_s3 = inlined_call_operand.hbm [shape: f32[8,128], index: 3, kind: output, shape index: {}]  }
   0x1   :  { %9 = vsyncpa [#allocation6], 0 }
   0x2   :  { %10 = vsyncpa [#allocation4], 0  ;;  %s684_s12 = smov [#allocation2]   ;;  %s685_s14 = smov [#allocation5]  }
   0x3   :  { %s17_s13 = sshll.u32 %s684_s12, 4  ;;  %s26_s15 = sshll.u32 %s685_s14, 4  ;;  %s18_s13 = int_to_ptr.vmem [resolvable:$true] %s17_s13  ;;  %s711_s15 = int_to_ptr.vmem [resolvable:$true] %s26_s15 }
   0x4   :  { %s612_s18 = scalar_lea.hbm %s781_s0, 256 }
   0x5   :  { %p613_p0 = scmp.ne.s32.totalorder %s781_s0, %s612_s18  ;;  %p616_p1 = scmp.lt.u32.totalorder %s612_s18, %s781_s0 }
   0x7   :  { %p618_p2 = pnand %p616_p1, %p613_p0 }
   0x9   :  { %621 = shalt.err (!%p618_p2)
}
   0xa   :  { %s622_s23 = scalar_lea.vmem %s18_s13, 256  ;;  %p627_p4 = scmp.lt.s32.totalorder %s18_s13, %s18_s13 }
   0xb   :  { %p623_p3 = scmp.ne.s32.totalorder %s18_s13, %s622_s23  ;;  %p628_p5 = scmp.lt.s32.totalorder %s622_s23, %s622_s23 }
   0xd   :  { %p629_p6 = por %p628_p5, %p627_p4 }
   0xf   :  { %p630_p7 = pnand %p629_p6, %p623_p3 }
  0x11   :  { %633 = shalt.err (!%p630_p7)
}
  0x12   :  { %20 = dma.hbm_to_vmem [thread:$0]  %s781_s0, 256, %s18_s13, [#allocation3]  }
  0x13   :  { %s634_s28 = scalar_lea.hbm %s782_s1, 4096 }
  0x14   :  { %p635_p8 = scmp.ne.s32.totalorder %s782_s1, %s634_s28  ;;  %p638_p9 = scmp.lt.u32.totalorder %s634_s28, %s782_s1 }
  0x16   :  { %p640_p10 = pnand %p638_p9, %p635_p8 }
  0x18   :  { %643 = shalt.err (!%p640_p10)
}
  0x19   :  { %s644_s6 = scalar_lea.vmem %s711_s15, 4096  ;;  %p649_p12 = scmp.lt.s32.totalorder %s711_s15, %s711_s15 }
  0x1a   :  { %p645_p11 = scmp.ne.s32.totalorder %s711_s15, %s644_s6  ;;  %p650_p13 = scmp.lt.s32.totalorder %s644_s6, %s644_s6 }
  0x1c   :  { %p651_p0 = por %p650_p13, %p649_p12 }
  0x1e   :  { %p652_p1 = pnand %p651_p0, %p645_p11 }
  0x20   :  { %655 = shalt.err (!%p652_p1)
}
  0x21   :  { %s686_s0 = smov 64   ;;  %s687_s7 = smov 4  }
  0x22   :  { %32 = dma.hbm_to_vmem [thread:$0]  %s782_s1, 4096, %s711_s15, [#allocation6], %s686_s0, %s686_s0, %s687_s7  }
  0x23   :  { %678 = dma.done.wait [#allocation3], 256  }
  0x24   :  { %679 = vsyncadd [#allocation3], 4294967040 }
  0x25   :  { %680 = dma.done.wait [#allocation6], 4096  }
  0x26   :  { %681 = vsyncadd [#allocation6], 4294963200  ;;  %v688_v0 = vmov 0.0   ;;  %v580_v1 = vld [vmem:[#allocation5 + $0x40] sm:$0xff]   ;;  %v582_v3 = vld [vmem:[#allocation5 + $0x48] sm:$0xff]   ;;  %vm689_vm0 = vmmov 0  }
  0x27   :  { %533 = vmatprep.subr.bf16.mxu1 %v688_v0  ;;  %v581_v2 = vld [vmem:[#allocation5] sm:$0xff]   ;;  %493 = vmatprep.subr.bf16.mxu0 %v580_v1  ;;  %v583_v4 = vld [vmem:[#allocation5 + $0x8] sm:$0xff]   ;;  %v584_v5 = vld [vmem:[#allocation5 + $0x50] sm:$0xff]   ;;  %s690_s15 = smov [#allocation7]  }
  0x28   :  { %494 = vmatpush3.bf16.msra.mxu0 %v581_v2  ;;  %v585_v6 = vld [vmem:[#allocation5 + $0x10] sm:$0xff]   ;;  %v586_v7 = vld [vmem:[#allocation5 + $0x58] sm:$0xff]   ;;  %v588_v9 = vld [vmem:[#allocation5 + $0x60] sm:$0xff]   ;;  %549 = vmatprep.mubr.msk.bf16.mxu1 %vm689_vm0, %v688_v0  ;;  %s448_s16 = sshll.u32 %s690_s15, 4  ;;  %s449_s16 = int_to_ptr.vmem [resolvable:$true] %s448_s16 }
  0x29   :  { %495 = vmatprep.subr.bf16.mxu0 %v582_v3  ;;  %v587_v8 = vld [vmem:[#allocation5 + $0x18] sm:$0xff]   ;;  %v589_v10 = vld [vmem:[#allocation5 + $0x20] sm:$0xff]   ;;  %v590_v11 = vld [vmem:[#allocation5 + $0x68] sm:$0xff]   ;;  %s656_s17 = scalar_lea.vmem %s449_s16, 128  ;;  %p661_p3 = scmp.lt.s32.totalorder %s449_s16, %s449_s16 }
  0x2a   :  { %v43_v12 = vld [vmem:[#allocation2 + $0x8] sm:$0xff]  ;;  %v596_v14 = vld [vmem:[#allocation5 + $0x80] sm:$0xff]   ;;  %v591_v15 = vld [vmem:[#allocation5 + $0x28] sm:$0xff]   ;;  %p657_p2 = scmp.ne.s32.totalorder %s449_s16, %s656_s17  ;;  %p662_p4 = scmp.lt.s32.totalorder %s656_s17, %s656_s17 }
  0x2b   :  { %v45_v13 = vpack.c.bf16 %v43_v12, %v43_v12  ;;  %v592_v16 = vld [vmem:[#allocation5 + $0x70] sm:$0xff]   ;;  %534 = vmatpush3.bf16.msra.mxu1 %v596_v14  ;;  %v597_v17 = vld [vmem:[#allocation5 + $0x88] sm:$0xff]   ;;  %v594_v19 = vld [vmem:[#allocation5 + $0x78] sm:$0xff]  }
  0x2c   :  { %496 = vmatpush3.bf16.msra.mxu0 %v583_v4  ;;  %v593_v18 = vld [vmem:[#allocation5 + $0x30] sm:$0xff]   ;;  %535 = vmatprep.subr.bf16.mxu1 %v688_v0  ;;  %v595_v21 = vld [vmem:[#allocation5 + $0x38] sm:$0xff]   ;;  %v600_v25 = vld [vmem:[#allocation5 + $0xa0] sm:$0xff]   ;;  %p663_p5 = por %p662_p4, %p661_p3 }
  0x2d   :  { %497 = vmatprep.subr.bf16.mxu0 %v584_v5  ;;  %211 = vmatprep.mubr.bf16.mxu0 %v45_v13  ;;  %v598_v20 = vld [vmem:[#allocation5 + $0x90] sm:$0xff]   ;;  %v599_v23 = vld [vmem:[#allocation5 + $0x98] sm:$0xff]   ;;  %v601_v26 = vld [vmem:[#allocation5 + $0xa8] sm:$0xff]  }
  0x2e   :  { %v42_v22 = vld [vmem:[#allocation2] sm:$0xff]  ;;  %v603_v28 = vld [vmem:[#allocation5 + $0xb8] sm:$0xff]   ;;  %v604_v29 = vld [vmem:[#allocation5 + $0xc0] sm:$0xff]   ;;  %p664_p6 = pnand %p663_p5, %p657_p2 }
  0x2f   :  { %536 = vmatpush3.bf16.msra.mxu1 %v597_v17  ;;  %v44_v24 = vpack.c.bf16 %v42_v22, %v42_v22  ;;  %v602_v27 = vld [vmem:[#allocation5 + $0xb0] sm:$0xff]   ;;  %v605_v30 = vld [vmem:[#allocation5 + $0xc8] sm:$0xff]   ;;  %v607_v32 = vld [vmem:[#allocation5 + $0xd8] sm:$0xff]  }
  0x30   :  { %498 = vmatpush3.bf16.msra.mxu0 %v585_v6  ;;  %537 = vmatprep.subr.bf16.mxu1 %v688_v0  ;;  %v606_v31 = vld [vmem:[#allocation5 + $0xd0] sm:$0xff]   ;;  %v608_v33 = vld [vmem:[#allocation5 + $0xe0] sm:$0xff]   ;;  %v609_v34 = vld [vmem:[#allocation5 + $0xe8] sm:$0xff]  }
  0x31   :  { %499 = vmatprep.subr.bf16.mxu0 %v586_v7  ;;  %v458_v36 = vld [vmem:[%s783_s2] ss:$0 sm:$0xff]  ;;  %v611_v45 = vld [vmem:[#allocation5 + $0xf8] sm:$0xff]   ;;  %v475_v46 = vld [vmem:[%s783_s2 + $0x1] ss:$0 sm:$0xff] }
  0x32   :  { %v610_v44 = vld [vmem:[#allocation5 + $0xf0] sm:$0xff]  }
  0x33   :  { %538 = vmatpush3.bf16.msra.mxu1 %v598_v20  ;;  %v484_v54 = vld [vmem:[%s783_s2 + $0x2] ss:$0 sm:$0xff] }
  0x34   :  { %500 = vmatpush3.bf16.msra.mxu0 %v587_v8  ;;  %539 = vmatprep.subr.bf16.mxu1 %v688_v0 }
  0x35   :  { %501 = vmatprep.subr.bf16.mxu0 %v588_v9 }
  0x37   :  { %540 = vmatpush3.bf16.msra.mxu1 %v599_v23 }
  0x38   :  { %502 = vmatpush3.bf16.msra.mxu0 %v589_v10  ;;  %541 = vmatprep.subr.bf16.mxu1 %v688_v0 }
  0x39   :  { %503 = vmatprep.subr.bf16.mxu0 %v590_v11 }
  0x3b   :  { %542 = vmatpush3.bf16.msra.mxu1 %v600_v25 }
  0x3c   :  { %504 = vmatpush3.bf16.msra.mxu0 %v591_v15  ;;  %543 = vmatprep.subr.bf16.mxu1 %v688_v0 }
  0x3d   :  { %505 = vmatprep.subr.bf16.mxu0 %v592_v16 }
  0x3f   :  { %544 = vmatpush3.bf16.msra.mxu1 %v601_v26 }
  0x40   :  { %506 = vmatpush3.bf16.msra.mxu0 %v593_v18  ;;  %545 = vmatprep.subr.bf16.mxu1 %v688_v0 }
  0x41   :  { %507 = vmatprep.subr.bf16.mxu0 %v594_v19 }
  0x43   :  { %546 = vmatpush3.bf16.msra.mxu1 %v602_v27 }
  0x44   :  { %508 = vmatpush3.bf16.msra.mxu0 %v595_v21  ;;  %547 = vmatprep.subr.bf16.mxu1 %v688_v0 }
  0x45   :  { %553 = vmatprep.subr.bf16.mxu0 %v688_v0 }
  0x47   :  { %212 = vmatmul.mubr.bf16.vlgmr.msra.gmra.mrb[0].mxu0 %v44_v24  ;;  %548 = vmatpush3.bf16.msra.mxu1 %v603_v28 }
  0x48   :  { %569 = vmatprep.mubr.msk.bf16.mxu0 %vm689_vm0, %v688_v0  ;;  %554 = vmatpush3.bf16.msra.mxu0 %v604_v29 }
  0x49   :  { %555 = vmatprep.subr.bf16.mxu0 %v688_v0 }
  0x4c   :  { %556 = vmatpush3.bf16.msra.mxu0 %v605_v30 }
  0x4d   :  { %557 = vmatprep.subr.bf16.mxu0 %v688_v0 }
  0x50   :  { %558 = vmatpush3.bf16.msra.mxu0 %v606_v31 }
  0x51   :  { %559 = vmatprep.subr.bf16.mxu0 %v688_v0 }
  0x54   :  { %560 = vmatpush3.bf16.msra.mxu0 %v607_v32 }
  0x55   :  { %561 = vmatprep.subr.bf16.mxu0 %v688_v0 }
  0x58   :  { %562 = vmatpush3.bf16.msra.mxu0 %v608_v33 }
  0x59   :  { %563 = vmatprep.subr.bf16.mxu0 %v688_v0 }
  0x5c   :  { %564 = vmatpush3.bf16.msra.mxu0 %v609_v34 }
  0x5d   :  { %565 = vmatprep.subr.bf16.mxu0 %v688_v0 }
  0x60   :  { %566 = vmatpush3.bf16.msra.mxu0 %v610_v44 }
  0x61   :  { %567 = vmatprep.subr.bf16.mxu0 %v688_v0 }
  0x64   :  { %568 = vmatpush3.bf16.msra.mxu0 %v611_v45 }
 0x11a   :  { %v509_v35 = vpop.f32.mrb[0].mxu0 }
 0x11b   :  { %v510_v37 = vpop.f32.mrb[1].mxu0 }
 0x11c   :  { %v511_v38 = vadd.f32 %v510_v37, %v509_v35  ;;  %v512_v39 = vpop.f32.mrb[2].mxu0 }
 0x11d   :  { %v513_v40 = vpop.f32.mrb[3].mxu0 }
 0x11e   :  { %v214_v41 = vadd.f32 %v511_v38, %v458_v36 }
 0x120   :  { %v219_v42 = vmax.f32 %v214_v41, 0.0 }
 0x122   :  { %v220_v43 = vpack.c.bf16 %v219_v42, %v219_v42 }
 0x124   :  { %550 = vmatmul.mubr.bf16.vlgmr.msra.gmra.mrb[0].mxu1 %v220_v43 }
 0x1f7   :  { %v324_v47 = vpop.f32.mrb[0].mxu1 }
 0x1f8   :  { %v325_v48 = vadd.f32 %v475_v46, %v324_v47  ;;  %v551_v49 = vpop.f32.mrb[1].mxu1 }
 0x1f9   :  { %v327_v50 = vpop.f32.mrb[2].mxu1 }
 0x1fa   :  { %v330_v51 = vmax.f32 %v325_v48, 0.0  ;;  %v552_v52 = vpop.f32.mrb[3].mxu1 }
 0x1fc   :  { %v331_v53 = vpack.c.bf16 %v330_v51, %v330_v51 }
 0x1fe   :  { %570 = vmatmul.mubr.bf16.vlgmr.msra.gmra.mrb[4].mxu0 %v331_v53 }
 0x2d1   :  { %v435_v55 = vpop.f32.mrb[4].mxu0 }
 0x2d2   :  { %v436_v56 = vadd.f32 %v484_v54, %v435_v55  ;;  %v571_v57 = vpop.f32.mrb[5].mxu0 }
 0x2d3   :  { %v438_v58 = vpop.f32.mrb[6].mxu0 }
 0x2d4   :  { %441 = vst [vmem:[#allocation7] sm:$0xff] %v436_v56  ;;  %v572_v59 = vpop.f32.mrb[7].mxu0 }
 0x2d5   :  { %667 = shalt.err (!%p664_p6)
}
 0x2d6   :  { %s668_s2 = scalar_lea.hbm %s784_s3, 128 }
 0x2d7   :  { %p669_p7 = scmp.ne.s32.totalorder %s784_s3, %s668_s2  ;;  %p672_p8 = scmp.lt.u32.totalorder %s668_s2, %s784_s3 }
 0x2d9   :  { %p674_p9 = pnand %p672_p8, %p669_p7 }
 0x2db   :  { %677 = shalt.err (!%p674_p9)
}
 0x2dc   :  { %451 = dma.vmem_to_hbm [thread:$0]  %s449_s16, 128, %s784_s3, [#allocation4]  }
 0x2dd   :  { %682 = dma.done.wait [#allocation4], 128  }
 0x2de   :  { %683 = vsyncadd [#allocation4], 4294967168 }
 0x2df   :  { %455 = vsyncpa [#allocation3], 1 }
 0x2e0   :  { %456 = vsyncpa [#allocation6], 1 }
 0x2e1   :  { %457 = vsyncpa [#allocation4], 1 }

</bundles_post_ra>
